<compile_context>
chip_gen: v5e
topology: v5e:2x2
jax: 0.10.0
libtpu: 0.0.40
codegen_flags: <defaults>
</compile_context>

<pallas_src>
import jax
import jax.numpy as jnp
from jax.experimental import pallas as pl
from jax.experimental.pallas import tpu as pltpu


def _zero_mul_kernel(x_ref, o_ref):
    # o = x * 0.0  (elementwise; keeps dtype and the mul(0.0) semantics)
    o_ref[...] = (x_ref[...] * 0.0).astype(o_ref.dtype)


def zero_forward(x, stride):
    """Pallas implementation of Zero.forward.

    x: (N, C, L).  Returns x.mul(0.0) if stride == 1,
    else x[:, :, ::stride].mul(0.0)  (shape (N, C, ceil(L/stride))).
    """
    if stride != 1:
        # Mirrors PyTorch's x[:, :, ::self.stride] (view/strided slice).
        x = x[:, :, ::stride]

    N, C, L_out = x.shape
    M = N * C
    x2 = x.reshape(M, L_out)  # rows = (n, c) pairs, lanes = spatial positions

    # Row tile: must be a multiple of 8 (sublane) unless it spans the full M.
    TM = M if M <= 256 else 256
    # Lane tile: must be a multiple of 128 unless it spans the full L_out.
    TL = L_out if L_out <= 2048 else 2048

    grid = (pl.cdiv(M, TM), pl.cdiv(L_out, TL))

    y = pl.pallas_call(
        _zero_mul_kernel,
        out_shape=jax.ShapeDtypeStruct((M, L_out), x.dtype),
        grid=grid,
        in_specs=[pl.BlockSpec((TM, TL), lambda i, j: (i, j))],
        out_specs=pl.BlockSpec((TM, TL), lambda i, j: (i, j)),
        compiler_params=pltpu.CompilerParams(
            dimension_semantics=("parallel", "parallel"),
        ),
    )(x2)

    return y.reshape(N, C, L_out)


def _reference(x, stride):
    """Pure-JAX reference replicating the PyTorch forward."""
    if stride == 1:
        return x * 0.0
    return x[:, :, ::stride] * 0.0


if __name__ == "__main__":
    key = jax.random.PRNGKey(0)

    N, C, L = 2, 4, 16
    x = jax.random.normal(key, (N, C, L), dtype=jnp.float32)

    # Exercise both branches of the module: stride=1 (identity shape) and
    # stride=2 (temporal down-sampling), as the constructor allows either.
    for stride in (1, 2):
        out = zero_forward(x, stride)
        out = jax.block_until_ready(out)

        ref = _reference(x, stride)
        assert out.shape == ref.shape, (stride, out.shape, ref.shape)
        assert jnp.array_equal(out, ref), f"mismatch vs reference (stride={stride})"

    print("KERNEL_OK")
</pallas_src>

<mosaic_0001>
module attributes {stable_mosaic.version = 11 : i64} {
  func.func @_zero_mul_kernel(%arg0: i32, %arg1: i32, %arg2: memref<8x16xf32, #tpu.memory_space<vmem>>, %arg3: memref<8x16xf32, #tpu.memory_space<vmem>>) attributes {dimension_semantics = [#tpu.dimension_semantics<parallel>, #tpu.dimension_semantics<parallel>], iteration_bounds = array<i64: 1, 1>, scalar_prefetch = 0 : i64, scratch_operands = 0 : i64, tpu.core_type = #tpu.core_type<tc>, window_params = [{transform_indices = @transform_0, window_bounds = array<i64: 8, 16>}, {transform_indices = @transform_1, window_bounds = array<i64: 8, 16>}]} {
    %c0 = arith.constant 0 : index
    %c0_0 = arith.constant 0 : index
    %0 = vector.load %arg2[%c0, %c0_0] : memref<8x16xf32, #tpu.memory_space<vmem>>, vector<8x16xf32>
    %cst = arith.constant 0.000000e+00 : f32
    %1 = vector.broadcast %cst : f32 to vector<8x16xf32>
    %2 = arith.mulf %0, %1 : vector<8x16xf32>
    %c0_1 = arith.constant 0 : index
    %c0_2 = arith.constant 0 : index
    %3 = vector.load %arg3[%c0_1, %c0_2] : memref<8x16xf32, #tpu.memory_space<vmem>>, vector<8x16xf32>
    tpu.vector_store %arg3[%c0_1, %c0_2], %2 {strides = array<i32>} : memref<8x16xf32, #tpu.memory_space<vmem>>, vector<8x16xf32>,
    return
  }
  func.func @transform_0(%arg0: i32, %arg1: i32) -> (i32, i32) {
    %c0_i32 = arith.constant 0 : i32
    return %arg0, %arg1 : i32, i32
  }
  func.func @transform_1(%arg0: i32, %arg1: i32) -> (i32, i32) {
    %c0_i32 = arith.constant 0 : i32
    return %arg0, %arg1 : i32, i32
  }
}

</mosaic_0001>

<bundles_post_ra>
// kernel: tpu_custom_call.1
= control target key start
LH: loop header
LB: loop body
LE: loop exit
PB: predicated region body
PF: predicated region fallthrough
CT: control target
= control target key end

     0   :  { %6 = vsyncpa [#allocation3], 0  ;;  %s116_s0 = inlined_call_operand.hbm [shape: f32[8,16], index: 0, kind: input, shape index: {}]   ;;  %s117_s1 = inlined_call_operand.hbm [shape: f32[8,16], index: 1, kind: output, shape index: {}]  }
   0x1   :  { %7 = vsyncpa [#allocation4], 0  ;;  %s13_s8 = sshll.u32 %s116_s0, 4  ;;  %s98_s9 = smov [#allocation2]   ;;  %s14_s8 = int_to_ptr.hbm [resolvable:$true] %s13_s8 }
   0x2   :  { %s15_s10 = sshll.u32 %s98_s9, 4  ;;  %s16_s10 = int_to_ptr.vmem [resolvable:$true] %s15_s10 }
   0x3   :  { %18 = dma.hbm_to_vmem [thread:$0]  %s14_s8, 128, %s16_s10, [#allocation3]  }
   0x4   :  { %94 = dma.done.wait [#allocation3], 128  }
   0x5   :  { %95 = vsyncadd [#allocation3], 4294967168  ;;  %s99_s11 = smov [#allocation5]   ;;  %s34_s15 = sshll.u32 %s117_s1, 4  ;;  %v23_v0 = vld [vmem:[#allocation2] sm:$0xff]  ;;  %vm25_vm0 = vcmask 130048   ;;  %s35_s15 = int_to_ptr.hbm [resolvable:$true] %s34_s15 }
   0x6   :  { %s32_s12 = sshll.u32 %s99_s11, 4  ;;  %v24_v1 = vmul.f32 0.0, %v23_v0  ;;  %s33_s12 = int_to_ptr.vmem [resolvable:$true] %s32_s12 }
   0x8   :  { %26 = vst.msk [vmem:[#allocation5] sm:$0xff] %vm25_vm0, %v24_v1 }
   0x9   :  { %37 = dma.vmem_to_hbm [thread:$0]  %s33_s12, 128, %s35_s15, [#allocation4]  }
   0xa   :  { %96 = dma.done.wait [#allocation4], 128  }
   0xb   :  { %97 = vsyncadd [#allocation4], 4294967168 }
   0xc   :  { %42 = vsyncpa [#allocation3], 1 }
   0xd   :  { %43 = vsyncpa [#allocation4], 1 }

</bundles_post_ra>
